<compile_context>
chip_gen: v7x
topology: tpu7x:2x2x1
jax: 0.10.0
libtpu: 0.0.40
codegen_flags: <defaults>
</compile_context>

<pallas_src>
import math

import jax
import jax.numpy as jnp
import numpy as np
from jax import lax
from jax.experimental import pallas as pl
from jax.experimental.pallas import tpu as pltpu

DILATION = 3  # fixed in the PyTorch module


def _conv_out_len(L, K, stride, padding, dilation):
    return (L + 2 * padding - dilation * (K - 1) - 1) // stride + 1


def _make_fused_kernel(layer_cfgs, dilation):
    """Build the fused kernel body for a static stack of dilated conv+ReLU layers."""
    n_layers = len(layer_cfgs)

    def kernel(*refs):
        # refs = [x, w_0, b_0, ..., w_{n-1}, b_{n-1}, out, pad_scratch_0, ...]
        x_ref = refs[0]
        o_ref = refs[1 + 2 * n_layers]
        scratches = refs[2 + 2 * n_layers:]

        h = x_ref[0]                                    # (C_in0, L_in0), NCL tile
        for i, cfg in enumerate(layer_cfgs):
            w_ref = refs[1 + 2 * i]                     # (K, C_out, C_in)
            b_ref = refs[2 + 2 * i]                     # (C_out, 1)
            pad_ref = scratches[i]                      # (C_in, L_pad) VMEM scratch

            K, pad, stride = cfg["K"], cfg["padding"], cfg["stride"]
            L_in, L_full, L_out = cfg["L_in"], cfg["L_full"], cfg["L_out"]

            # Zero-padded layer input kept entirely in VMEM (no HBM traffic).
            pad_ref[...] = jnp.zeros_like(pad_ref)
            pad_ref[:, pad:pad + L_in] = h

            # Dilated conv as K shifted matmuls over contiguous lane slices,
            # computed at stride 1 (L_full output columns), f32 accumulation.
            acc = jnp.dot(w_ref[0], pad_ref[:, 0:L_full],
                          preferred_element_type=jnp.float32)
            for k in range(1, K):
                lo = k * dilation
                acc = acc + jnp.dot(w_ref[k], pad_ref[:, lo:lo + L_full],
                                    preferred_element_type=jnp.float32)
            acc = jnp.maximum(acc + b_ref[...], 0.0)    # bias + ReLU

            if stride > 1:
                # Decimate the length (lane) axis with an exact 0/1 selection
                # matmul: out[:, t] = acc[:, t*stride].  Avoids strided lane loads.
                rows = lax.broadcasted_iota(jnp.int32, (L_full, L_out), 0)
                cols = lax.broadcasted_iota(jnp.int32, (L_full, L_out), 1)
                sel = (rows == cols * stride).astype(jnp.float32)
                acc = jnp.dot(acc, sel, preferred_element_type=jnp.float32)

            h = acc                                     # (C_out, L_out)

        o_ref[0] = h.astype(o_ref.dtype)                # lane-dense NCL store

    return kernel


def prenetwork_pallas(x_ncl, params, strides, paddings, dilation=DILATION):
    """Fused PreNetwork forward: (B, C_in, L) -> (B, hidden, L_out), NCL layout."""
    B, C_in, L = x_ncl.shape
    assert len(params) == len(strides) == len(paddings)

    layer_cfgs = []
    inputs = [x_ncl.astype(jnp.float32)]
    in_specs = [pl.BlockSpec((1, C_in, L), lambda b: (b, 0, 0))]
    scratch_shapes = []

    c_in, l_in = C_in, L
    for (w, bias), s, p in zip(params, strides, paddings):
        C_out, C_in_w, K = w.shape
        assert C_in_w == c_in
        L_pad = l_in + 2 * p
        L_full = L_pad - dilation * (K - 1)             # stride-1 output length
        L_out = _conv_out_len(l_in, K, s, p, dilation)
        assert L_out > 0 and L_full > 0, "output length must be positive"
        layer_cfgs.append(dict(C_in=c_in, C_out=C_out, K=K, stride=s, padding=p,
                               L_in=l_in, L_pad=L_pad, L_full=L_full, L_out=L_out))

        # (C_out, C_in, K) -> (K, C_out, C_in) so w_ref[k] is a clean 2-D tile.
        inputs.append(jnp.transpose(w, (2, 0, 1)).astype(jnp.float32))
        inputs.append(bias.reshape(C_out, 1).astype(jnp.float32))
        in_specs.append(pl.BlockSpec((K, C_out, c_in), lambda b: (0, 0, 0)))
        in_specs.append(pl.BlockSpec((C_out, 1), lambda b: (0, 0)))
        scratch_shapes.append(pltpu.VMEM((c_in, L_pad), jnp.float32))

        c_in, l_in = C_out, L_out

    kernel = _make_fused_kernel(layer_cfgs, dilation)
    return pl.pallas_call(
        kernel,
        out_shape=jax.ShapeDtypeStruct((B, c_in, l_in), jnp.float32),
        grid=(B,),
        in_specs=in_specs,
        out_specs=pl.BlockSpec((1, c_in, l_in), lambda b: (b, 0, 0)),
        scratch_shapes=scratch_shapes,
        compiler_params=pltpu.CompilerParams(
            dimension_semantics=("parallel",)),
    )(*inputs)


def init_prenetwork_params(key, input_dim, hidden_dim, filter_sizes):
    """Deterministic init mimicking PyTorch Conv1d default (uniform +-1/sqrt(fan_in))."""
    params = []
    c_in = input_dim
    for k in filter_sizes:
        key, wk, bk = jax.random.split(key, 3)
        bound = 1.0 / math.sqrt(c_in * k)
        w = jax.random.uniform(wk, (hidden_dim, c_in, k), jnp.float32,
                               minval=-bound, maxval=bound)
        b = jax.random.uniform(bk, (hidden_dim,), jnp.float32,
                               minval=-bound, maxval=bound)
        params.append((w, b))
        c_in = hidden_dim
    return params


def prenetwork_reference(x_ncl, params, strides, paddings, dilation=DILATION):
    """Pure-JAX reference (lax.conv_general_dilated) for verification."""
    h = x_ncl
    for (w, b), s, p in zip(params, strides, paddings):
        y = lax.conv_general_dilated(
            h, w, window_strides=(s,), padding=[(p, p)],
            rhs_dilation=(dilation,),
            dimension_numbers=("NCH", "OIH", "NCH"))
        h = jnp.maximum(y + b[None, :, None], 0.0)
    return h


if __name__ == "__main__":
    # Module config (matches PreNetwork(__init__) semantics)
    input_dim = 4
    hidden_dim = 32
    strides = [1, 2]
    filter_sizes = [3, 3]
    paddings = [3, 3]

    key = jax.random.PRNGKey(0)
    key, xk = jax.random.split(key)
    x = jax.random.normal(xk, (2, input_dim, 16), dtype=jnp.float32)  # (B, C, L)

    params = init_prenetwork_params(key, input_dim, hidden_dim, filter_sizes)

    fwd = jax.jit(lambda xx, pp: prenetwork_pallas(xx, pp, strides, paddings))
    out = jax.block_until_ready(fwd(x, params))

    ref = jax.block_until_ready(
        prenetwork_reference(x, params, strides, paddings))

    np.testing.assert_allclose(np.asarray(out), np.asarray(ref),
                               rtol=1e-5, atol=1e-5)
    print("KERNEL_OK")
</pallas_src>

<mosaic_0001>
module attributes {stable_mosaic.version = 11 : i64} {
  func.func @kernel(%arg0: i32, %arg1: memref<1x4x16xf32, #tpu.memory_space<vmem>>, %arg2: memref<3x32x4xf32, #tpu.memory_space<vmem>>, %arg3: memref<32x1xf32, #tpu.memory_space<vmem>>, %arg4: memref<3x32x32xf32, #tpu.memory_space<vmem>>, %arg5: memref<32x1xf32, #tpu.memory_space<vmem>>, %arg6: memref<1x32x8xf32, #tpu.memory_space<vmem>>, %arg7: memref<4x22xf32, #tpu.memory_space<vmem>>, %arg8: memref<32x22xf32, #tpu.memory_space<vmem>>) attributes {dimension_semantics = [#tpu.dimension_semantics<parallel>], iteration_bounds = array<i64: 2>, scalar_prefetch = 0 : i64, scratch_operands = 2 : i64, tpu.core_type = #tpu.core_type<tc>, window_params = [{transform_indices = @transform_0, window_bounds = array<i64: 1, 4, 16>}, {pipeline_mode = #tpu.pipeline_mode<synchronous>, transform_indices = @transform_1, window_bounds = array<i64: 3, 32, 4>}, {pipeline_mode = #tpu.pipeline_mode<synchronous>, transform_indices = @transform_2, window_bounds = array<i64: 32, 1>}, {pipeline_mode = #tpu.pipeline_mode<synchronous>, transform_indices = @transform_3, window_bounds = array<i64: 3, 32, 32>}, {pipeline_mode = #tpu.pipeline_mode<synchronous>, transform_indices = @transform_4, window_bounds = array<i64: 32, 1>}, {transform_indices = @transform_5, window_bounds = array<i64: 1, 32, 8>}]} {
    %c0 = arith.constant 0 : index
    %c0_0 = arith.constant 0 : index
    %c0_1 = arith.constant 0 : index
    %0 = vector.load %arg1[%c0, %c0_0, %c0_1] : memref<1x4x16xf32, #tpu.memory_space<vmem>>, vector<1x4x16xf32>
    %1 = vector.shape_cast %0 : vector<1x4x16xf32> to vector<4x16xf32>
    %cst = arith.constant 0.000000e+00 : f32
    %2 = vector.broadcast %cst : f32 to vector<4x22xf32>
    %c0_2 = arith.constant 0 : index
    %c0_3 = arith.constant 0 : index
    %3 = vector.load %arg7[%c0_2, %c0_3] : memref<4x22xf32, #tpu.memory_space<vmem>>, vector<4x22xf32>
    tpu.vector_store %arg7[%c0_2, %c0_3], %2 {strides = array<i32>} : memref<4x22xf32, #tpu.memory_space<vmem>>, vector<4x22xf32>,
    %c0_4 = arith.constant 0 : index
    %c3 = arith.constant 3 : index
    %4 = vector.load %arg7[%c0_4, %c3] : memref<4x22xf32, #tpu.memory_space<vmem>>, vector<4x16xf32>
    tpu.vector_store %arg7[%c0_4, %c3], %1 {strides = array<i32>} : memref<4x22xf32, #tpu.memory_space<vmem>>, vector<4x16xf32>,
    %c0_5 = arith.constant 0 : index
    %c0_6 = arith.constant 0 : index
    %c0_7 = arith.constant 0 : index
    %5 = vector.load %arg2[%c0_5, %c0_6, %c0_7] : memref<3x32x4xf32, #tpu.memory_space<vmem>>, vector<1x32x4xf32>
    %6 = vector.shape_cast %5 : vector<1x32x4xf32> to vector<32x4xf32>
    %c0_8 = arith.constant 0 : index
    %c0_9 = arith.constant 0 : index
    %7 = vector.load %arg7[%c0_8, %c0_9] : memref<4x22xf32, #tpu.memory_space<vmem>>, vector<4x16xf32>
    %cst_10 = arith.constant dense<0.000000e+00> : vector<32x16xf32>
    %8 = tpu.matmul %6, %7, %cst_10 {dimension_numbers = #tpu.dot_dimension_numbers<[1], [0], [0], [1], [0, 0, 1, 1], [], []>} : vector<32x4xf32>, vector<4x16xf32>, vector<32x16xf32> -> vector<32x16xf32>
    %c1 = arith.constant 1 : index
    %c0_11 = arith.constant 0 : index
    %c0_12 = arith.constant 0 : index
    %9 = vector.load %arg2[%c1, %c0_11, %c0_12] : memref<3x32x4xf32, #tpu.memory_space<vmem>>, vector<1x32x4xf32>
    %10 = vector.shape_cast %9 : vector<1x32x4xf32> to vector<32x4xf32>
    %c0_13 = arith.constant 0 : index
    %c3_14 = arith.constant 3 : index
    %11 = vector.load %arg7[%c0_13, %c3_14] : memref<4x22xf32, #tpu.memory_space<vmem>>, vector<4x16xf32>
    %cst_15 = arith.constant dense<0.000000e+00> : vector<32x16xf32>
    %12 = tpu.matmul %10, %11, %cst_15 {dimension_numbers = #tpu.dot_dimension_numbers<[1], [0], [0], [1], [0, 0, 1, 1], [], []>} : vector<32x4xf32>, vector<4x16xf32>, vector<32x16xf32> -> vector<32x16xf32>
    %13 = arith.addf %8, %12 : vector<32x16xf32>
    %c2 = arith.constant 2 : index
    %c0_16 = arith.constant 0 : index
    %c0_17 = arith.constant 0 : index
    %14 = vector.load %arg2[%c2, %c0_16, %c0_17] : memref<3x32x4xf32, #tpu.memory_space<vmem>>, vector<1x32x4xf32>
    %15 = vector.shape_cast %14 : vector<1x32x4xf32> to vector<32x4xf32>
    %c0_18 = arith.constant 0 : index
    %c6 = arith.constant 6 : index
    %16 = vector.load %arg7[%c0_18, %c6] : memref<4x22xf32, #tpu.memory_space<vmem>>, vector<4x16xf32>
    %cst_19 = arith.constant dense<0.000000e+00> : vector<32x16xf32>
    %17 = tpu.matmul %15, %16, %cst_19 {dimension_numbers = #tpu.dot_dimension_numbers<[1], [0], [0], [1], [0, 0, 1, 1], [], []>} : vector<32x4xf32>, vector<4x16xf32>, vector<32x16xf32> -> vector<32x16xf32>
    %18 = arith.addf %13, %17 : vector<32x16xf32>
    %c0_20 = arith.constant 0 : index
    %c0_21 = arith.constant 0 : index
    %19 = vector.load %arg3[%c0_20, %c0_21] : memref<32x1xf32, #tpu.memory_space<vmem>>, vector<32x1xf32>
    %20 = vector.broadcast %19 : vector<32x1xf32> to vector<32x16xf32>
    %21 = arith.addf %18, %20 : vector<32x16xf32>
    %cst_22 = arith.constant 0.000000e+00 : f32
    %22 = vector.broadcast %cst_22 : f32 to vector<32x16xf32>
    %23 = arith.maximumf %21, %22 : vector<32x16xf32>
    %cst_23 = arith.constant 0.000000e+00 : f32
    %24 = vector.broadcast %cst_23 : f32 to vector<32x22xf32>
    %c0_24 = arith.constant 0 : index
    %c0_25 = arith.constant 0 : index
    %25 = vector.load %arg8[%c0_24, %c0_25] : memref<32x22xf32, #tpu.memory_space<vmem>>, vector<32x22xf32>
    tpu.vector_store %arg8[%c0_24, %c0_25], %24 {strides = array<i32>} : memref<32x22xf32, #tpu.memory_space<vmem>>, vector<32x22xf32>,
    %c0_26 = arith.constant 0 : index
    %c3_27 = arith.constant 3 : index
    %26 = vector.load %arg8[%c0_26, %c3_27] : memref<32x22xf32, #tpu.memory_space<vmem>>, vector<32x16xf32>
    tpu.vector_store %arg8[%c0_26, %c3_27], %23 {strides = array<i32>} : memref<32x22xf32, #tpu.memory_space<vmem>>, vector<32x16xf32>,
    %c0_28 = arith.constant 0 : index
    %c0_29 = arith.constant 0 : index
    %c0_30 = arith.constant 0 : index
    %27 = vector.load %arg4[%c0_28, %c0_29, %c0_30] : memref<3x32x32xf32, #tpu.memory_space<vmem>>, vector<1x32x32xf32>
    %28 = vector.shape_cast %27 : vector<1x32x32xf32> to vector<32x32xf32>
    %c0_31 = arith.constant 0 : index
    %c0_32 = arith.constant 0 : index
    %29 = vector.load %arg8[%c0_31, %c0_32] : memref<32x22xf32, #tpu.memory_space<vmem>>, vector<32x16xf32>
    %cst_33 = arith.constant dense<0.000000e+00> : vector<32x16xf32>
    %30 = tpu.matmul %28, %29, %cst_33 {dimension_numbers = #tpu.dot_dimension_numbers<[1], [0], [0], [1], [0, 0, 1, 1], [], []>} : vector<32x32xf32>, vector<32x16xf32>, vector<32x16xf32> -> vector<32x16xf32>
    %c1_34 = arith.constant 1 : index
    %c0_35 = arith.constant 0 : index
    %c0_36 = arith.constant 0 : index
    %31 = vector.load %arg4[%c1_34, %c0_35, %c0_36] : memref<3x32x32xf32, #tpu.memory_space<vmem>>, vector<1x32x32xf32>
    %32 = vector.shape_cast %31 : vector<1x32x32xf32> to vector<32x32xf32>
    %c0_37 = arith.constant 0 : index
    %c3_38 = arith.constant 3 : index
    %33 = vector.load %arg8[%c0_37, %c3_38] : memref<32x22xf32, #tpu.memory_space<vmem>>, vector<32x16xf32>
    %cst_39 = arith.constant dense<0.000000e+00> : vector<32x16xf32>
    %34 = tpu.matmul %32, %33, %cst_39 {dimension_numbers = #tpu.dot_dimension_numbers<[1], [0], [0], [1], [0, 0, 1, 1], [], []>} : vector<32x32xf32>, vector<32x16xf32>, vector<32x16xf32> -> vector<32x16xf32>
    %35 = arith.addf %30, %34 : vector<32x16xf32>
    %c2_40 = arith.constant 2 : index
    %c0_41 = arith.constant 0 : index
    %c0_42 = arith.constant 0 : index
    %36 = vector.load %arg4[%c2_40, %c0_41, %c0_42] : memref<3x32x32xf32, #tpu.memory_space<vmem>>, vector<1x32x32xf32>
    %37 = vector.shape_cast %36 : vector<1x32x32xf32> to vector<32x32xf32>
    %c0_43 = arith.constant 0 : index
    %c6_44 = arith.constant 6 : index
    %38 = vector.load %arg8[%c0_43, %c6_44] : memref<32x22xf32, #tpu.memory_space<vmem>>, vector<32x16xf32>
    %cst_45 = arith.constant dense<0.000000e+00> : vector<32x16xf32>
    %39 = tpu.matmul %37, %38, %cst_45 {dimension_numbers = #tpu.dot_dimension_numbers<[1], [0], [0], [1], [0, 0, 1, 1], [], []>} : vector<32x32xf32>, vector<32x16xf32>, vector<32x16xf32> -> vector<32x16xf32>
    %40 = arith.addf %35, %39 : vector<32x16xf32>
    %c0_46 = arith.constant 0 : index
    %c0_47 = arith.constant 0 : index
    %41 = vector.load %arg5[%c0_46, %c0_47] : memref<32x1xf32, #tpu.memory_space<vmem>>, vector<32x1xf32>
    %42 = vector.broadcast %41 : vector<32x1xf32> to vector<32x16xf32>
    %43 = arith.addf %40, %42 : vector<32x16xf32>
    %cst_48 = arith.constant 0.000000e+00 : f32
    %44 = vector.broadcast %cst_48 : f32 to vector<32x16xf32>
    %45 = arith.maximumf %43, %44 : vector<32x16xf32>
    %46 = tpu.iota {dimensions = array<i32: 0>} : vector<16x8xi32>
    %47 = tpu.iota {dimensions = array<i32: 1>} : vector<16x8xi32>
    %c2_i32 = arith.constant 2 : i32
    %48 = vector.broadcast %c2_i32 : i32 to vector<16x8xi32>
    %49 = arith.muli %47, %48 : vector<16x8xi32>
    %50 = arith.cmpi eq, %46, %49 : vector<16x8xi32>
    %51 = arith.extui %50 : vector<16x8xi1> to vector<16x8xi32>
    %52 = arith.sitofp %51 : vector<16x8xi32> to vector<16x8xf32>
    %cst_49 = arith.constant dense<0.000000e+00> : vector<32x8xf32>
    %53 = tpu.matmul %45, %52, %cst_49 {dimension_numbers = #tpu.dot_dimension_numbers<[1], [0], [0], [1], [0, 0, 1, 1], [], []>} : vector<32x16xf32>, vector<16x8xf32>, vector<32x8xf32> -> vector<32x8xf32>
    %c0_50 = arith.constant 0 : index
    %c0_51 = arith.constant 0 : index
    %c0_52 = arith.constant 0 : index
    %54 = vector.load %arg6[%c0_50, %c0_51, %c0_52] : memref<1x32x8xf32, #tpu.memory_space<vmem>>, vector<1x32x8xf32>
    %55 = vector.shape_cast %54 : vector<1x32x8xf32> to vector<32x8xf32>
    %56 = vector.shape_cast %53 : vector<32x8xf32> to vector<1x32x8xf32>
    tpu.vector_store %arg6[%c0_50, %c0_51, %c0_52], %56 {strides = array<i32>} : memref<1x32x8xf32, #tpu.memory_space<vmem>>, vector<1x32x8xf32>,
    return
  }
  func.func @transform_0(%arg0: i32) -> (i32, i32, i32) {
    %c0_i32 = arith.constant 0 : i32
    %c0_i32_0 = arith.constant 0 : i32
    %c0_i32_1 = arith.constant 0 : i32
    return %arg0, %c0_i32, %c0_i32_0 : i32, i32, i32
  }
  func.func @transform_1(%arg0: i32) -> (i32, i32, i32) {
    %c0_i32 = arith.constant 0 : i32
    %c0_i32_0 = arith.constant 0 : i32
    %c0_i32_1 = arith.constant 0 : i32
    %c0_i32_2 = arith.constant 0 : i32
    return %c0_i32, %c0_i32_0, %c0_i32_1 : i32, i32, i32
  }
  func.func @transform_2(%arg0: i32) -> (i32, i32) {
    %c0_i32 = arith.constant 0 : i32
    %c0_i32_0 = arith.constant 0 : i32
    %c0_i32_1 = arith.constant 0 : i32
    return %c0_i32, %c0_i32_0 : i32, i32
  }
  func.func @transform_3(%arg0: i32) -> (i32, i32, i32) {
    %c0_i32 = arith.constant 0 : i32
    %c0_i32_0 = arith.constant 0 : i32
    %c0_i32_1 = arith.constant 0 : i32
    %c0_i32_2 = arith.constant 0 : i32
    return %c0_i32, %c0_i32_0, %c0_i32_1 : i32, i32, i32
  }
  func.func @transform_4(%arg0: i32) -> (i32, i32) {
    %c0_i32 = arith.constant 0 : i32
    %c0_i32_0 = arith.constant 0 : i32
    %c0_i32_1 = arith.constant 0 : i32
    return %c0_i32, %c0_i32_0 : i32, i32
  }
  func.func @transform_5(%arg0: i32) -> (i32, i32, i32) {
    %c0_i32 = arith.constant 0 : i32
    %c0_i32_0 = arith.constant 0 : i32
    %c0_i32_1 = arith.constant 0 : i32
    return %arg0, %c0_i32, %c0_i32_0 : i32, i32, i32
  }
}

</mosaic_0001>

<bundles_post_ra>
// kernel: _lambda_.1
= control target key start
LH: loop header
LB: loop body
LE: loop exit
PB: predicated region body
PF: predicated region fallthrough
CT: control target
= control target key end

     0   :  { %s1463_s18 = smov 0   ;;  %s1626_s0 = inlined_call_operand.vmem [shape: f32[2,4,16], index: 0, kind: input, shape index: {}]   ;;  %s1627_s1 = inlined_call_operand.vmem [shape: f32[3,32,4], index: 1, kind: input, shape index: {}]   ;;  %s1628_s2 = inlined_call_operand.vmem [shape: f32[32,1], index: 2, kind: input, shape index: {}]   ;;  %s1629_s3 = inlined_call_operand.vmem [shape: f32[3,32,32], index: 3, kind: input, shape index: {}]   ;;  %s1630_s4 = inlined_call_operand.vmem [shape: f32[32,1], index: 4, kind: input, shape index: {}]   ;;  %s1631_s5 = inlined_call_operand.vmem [shape: f32[2,32,8], index: 5, kind: output, shape index: {}]  }
   0x1 LB: > { %s1156_s19 = sadd.s32 4294967295, %s1425_s18   ;;  %p1160_p0 = scmp.ge.s32.totalorder %s1425_s18, 1  ;;  %s1425_s18 = sphi %s1463_s18, %s15_s18  }
   0x2   : > { %p186_p1 = scmp.lt.s32.totalorder %s1425_s18, 3 }
   0x4   : > { %p187_p2 = pnand %p1160_p0, %p186_p1 }
   0x5   : > { %p213_p3 = scmp.lt.s32.totalorder (!%p187_p2), %s1156_s19, 1  ;;  %vm223_vm0 = vcmask (!%p187_p2), 175104   ;;  %v1427_v0 = vmov (!%p187_p2), 0.0   ;;  %s1428_s24 = smov (!%p187_p2), 3   ;;  %v1164_v2 = vld [vmem:[%s1627_s1 + $0x20] sm:$0xff] (!%p187_p2)  ;;  %vm244_vm1 = vcmask (!%p187_p2), 31744   ;;  %v986_v56 = vlaneseq (!%p187_p2) }
   0x6   : > { %190 = sbr.rel (%p187_p2) target bundleno = 1194 (0x4aa), region = 40  ;;  %224 = vst.msk [vmem:[#allocation2] sm:$0xf] (!%p187_p2), %vm223_vm0, %v1427_v0  ;;  %1265 = vmatprep.mubr.msk.f32.mxu0 (!%p187_p2), %vm244_vm1, %v1164_v2  ;;  %vm229_vm2 = vcmask (!%p187_p2), 150552   ;;  %s1429_s27 = smov (!%p187_p2), 122   ;;  %v554_v5 = vld [vmem:[%s1628_s2] sm:$0xff] (!%p187_p2) }
   0x7   : > { %s1430_s28 = smov (!%p187_p2), 125   ;;  %v1431_v6 = vmov (!%p187_p2), 0   ;;  %v555_v7 = vld [vmem:[%s1628_s2 + $0x8] sm:$0xff] (!%p187_p2)  ;;  %v556_v8 = vld [vmem:[%s1628_s2 + $0x10] sm:$0xff] (!%p187_p2)  ;;  %v557_v9 = vld [vmem:[%s1628_s2 + $0x18] sm:$0xff] (!%p187_p2)  ;;  %vm257_vm3 = vcmask (!%p187_p2), 1043456  }
   0x8   : > { %1397 = vset.pattern.permute.xlu1 (!%p187_p2), %v1431_v6  ;;  %1398 = vset.pattern.permute.xlu0 (!%p187_p2), %v1431_v6  ;;  %v1165_v11 = vld [vmem:[%s1627_s1 + $0x28] sm:$0xff] (!%p187_p2)  ;;  %v1166_v12 = vld [vmem:[%s1627_s1 + $0x30] sm:$0xff] (!%p187_p2)  ;;  %v1167_v14 = vld [vmem:[%s1627_s1 + $0x38] sm:$0xff] (!%p187_p2)  ;;  %vm586_vm4 = vcmask (!%p187_p2), 179200   ;;  %vm607_vm5 = vcmask (!%p187_p2), 154648   ;;  %vm641_vm6 = vcmask (!%p187_p2), 261120  }
   0x9   : > { %v231_v15 = vld [vmem:[%s1627_s1] sm:$0xff] (!%p187_p2)  ;;  %v232_v16 = vld [vmem:[%s1627_s1 + $0x8] sm:$0xff] (!%p187_p2)  ;;  %v233_v17 = vld [vmem:[%s1627_s1 + $0x10] sm:$0xff] (!%p187_p2)  ;;  %588 = vst.msk [vmem:[#allocation3 + $0x8] sm:$0xff] (!%p187_p2), %vm586_vm4, %v1427_v0  ;;  %v987_v57 = vshrl.u32 (!%p187_p2), %v986_v56, 7  ;;  %v990_v58 = vand.u32 (!%p187_p2), 127, %v986_v56 }
   0xa   : > { %v234_v18 = vld [vmem:[%s1627_s1 + $0x18] sm:$0xff] (!%p187_p2)  ;;  %v1178_v19 = vld [vmem:[%s1627_s1 + $0x40] sm:$0xff] (!%p187_p2)  ;;  %v1179_v20 = vld [vmem:[%s1627_s1 + $0x48] sm:$0xff] (!%p187_p2)  ;;  %587 = vst.msk [vmem:[#allocation3] sm:$0xff] (!%p187_p2), %vm586_vm4, %v1427_v0  ;;  %v1432_v61 = vmov (!%p187_p2), 1.0|1.0  }
   0xb   : > { %v1180_v21 = vld [vmem:[%s1627_s1 + $0x50] sm:$0xff] (!%p187_p2)  ;;  %v1181_v22 = vld [vmem:[%s1627_s1 + $0x58] sm:$0xff] (!%p187_p2)  ;;  %589 = vst.msk [vmem:[#allocation3 + $0x10] sm:$0xff] (!%p187_p2), %vm586_vm4, %v1427_v0  ;;  %590 = vst.msk [vmem:[#allocation3 + $0x18] sm:$0xff] (!%p187_p2), %vm586_vm4, %v1427_v0  ;;  %v988_v59 = vadd.s32 (!%p187_p2), 8, %v987_v57  ;;  %v991_v60 = vmul.u32 (!%p187_p2), 2, %v990_v58 }
   0xc   : > { %v1187_v45 = vld [vmem:[%s1629_s3 + $0x20] sm:$0xff] (!%p187_p2)  ;;  %v956_v53 = vld [vmem:[%s1630_s4 + $0x10] sm:$0xff] (!%p187_p2)  ;;  %v955_v54 = vld [vmem:[%s1630_s4 + $0x8] sm:$0xff] (!%p187_p2)  ;;  %vm998_vm10 = vcmask (!%p187_p2), 130048   ;;  %vm1096_vm11 = vcmask (!%p187_p2), 64512  }
   0xd   : > { %s1633_s19 = smov (!%p213_p3, %s1156_s19), 1  ;;  %1295 = vmatprep.mubr.msk.f32.mxu1 %vm641_vm6, %v1187_v45  ;;  %v954_v52 = vld [vmem:[%s1630_s4] sm:$0xff]  ;;  %v957_v55 = vld [vmem:[%s1630_s4 + $0x18] sm:$0xff]  ;;  %vm992_vm7 = vcmp.eq.s32.totalorder %v987_v57, %v991_v60  ;;  %vm993_vm8 = vcmp.eq.s32.totalorder %v988_v59, %v991_v60 }
   0xe   : > { %s1161_s20 = sshll.u32 %s1633_s19, 2  ;;  %vm1363_vm9 = vmpackc.low %vm993_vm8, %vm992_vm7  ;;  %s1217_s25 = sshll.u32 %s1633_s19, 5 }
   0xf   : > { %s216_s23 = scalar_lea.vmem %s1626_s0, %s1161_s20  ;;  %s221_s26 = scalar_lea.vmem %s1631_s5, %s1217_s25 }
  0x10   : > { %v222_v1 = vld [vmem:[%s216_s23] sm:$0xf] }
  0x11   : > { %226 = vrot.lane.b32.xlu0 %v222_v1, %s1428_s24 }
  0x83   : > { %v227_v3 = vpop.permute.xlu0 %226 }
  0x84   : > { %230 = vst.msk [vmem:[#allocation2] sm:$0xf] %vm229_vm2, %v227_v3 }
  0x8b   : > { %v235_v4 = vld [vmem:[#allocation2] sm:$0xf] }
  0x8c   : > { %449 = vrot.lane.b32.xlu1 %v235_v4, %s1429_s27  ;;  %242 = vrot.lane.b32.xlu0 %v235_v4, %s1430_s28 }
  0x90   : > { %560 = vperm.xlu1 %1397, %v554_v5   ;;  %565 = vperm.xlu0 %1398, %v555_v7   ;;  %v1188_v7 = vld [vmem:[%s1629_s3 + $0x28] sm:$0xff] }
  0x94   : > { %570 = vperm.xlu1 %1397, %v556_v8   ;;  %v1189_v8 = vld [vmem:[%s1629_s3 + $0x30] sm:$0xff] }
  0x98   : > { %575 = vperm.xlu1 %1397, %v557_v9  }
  0xfe   : > { %v243_v10 = vpop.permute.xlu0 %242  ;;  %v450_v13 = vpop.permute.xlu1 %449 }
  0xff   : > { %1263 = vmatprep.subr.msk.mxu0 %vm257_vm3, %v243_v10 }
 0x100   : > { %1264 = vmatpush3.msk.msra.mxu0 %vm257_vm3, %v243_v10 }
 0x101   : > { %1266 = vmatmul.mubr.msk.f32.vlgmr.msra.gmra.mrb[0].mxu0 %vm244_vm1, %v1165_v11  ;;  %1271 = vmatprep.subr.msk.mxu0 %vm257_vm3, %v235_v4 }
 0x102   : > { %1272 = vmatpush3.msk.msra.mxu0 %vm257_vm3, %v235_v4  ;;  %1268 = vmatprep.mubr.msk.f32.mxu0 %vm244_vm1, %v1166_v12  ;;  %v1190_v12 = vld [vmem:[%s1629_s3 + $0x38] sm:$0xff] }
 0x103   : > { %1279 = vmatprep.subr.msk.mxu0 %vm257_vm3, %v450_v13 }
 0x105   : > { %1269 = vmatmul.mubr.msk.f32.gmra.mrb[2].mxu0 %vm244_vm1, %v1167_v14 }
 0x106   : > { %1273 = vmatprep.mubr.msk.f32.mxu0 %vm244_vm1, %v231_v15 }
 0x109   : > { %1274 = vmatmul.mubr.msk.f32.vlgmr.msra.gmra.mrb[0].mxu0 %vm244_vm1, %v232_v16 }
 0x10a   : > { %1280 = vmatpush3.msk.msra.mxu0 %vm257_vm3, %v450_v13  ;;  %1276 = vmatprep.mubr.msk.f32.mxu0 %vm244_vm1, %v233_v17  ;;  %v612_v13 = vld [vmem:[%s1629_s3] sm:$0xff]  ;;  %v613_v17 = vld [vmem:[%s1629_s3 + $0x8] sm:$0xff] }
 0x10b   : > { %1364 = vmatprep.subr.msk.bf16.mxu0 %vm1363_vm9, %v1432_v61 }
 0x10d   : > { %1277 = vmatmul.mubr.msk.f32.gmra.mrb[2].mxu0 %vm244_vm1, %v234_v18  ;;  %v614_v18 = vld [vmem:[%s1629_s3 + $0x10] sm:$0xff] }
 0x10e   : > { %1281 = vmatprep.mubr.msk.f32.mxu0 %vm244_vm1, %v1178_v19 }
 0x10f   : > { %v561_v23 = vpop.permute.xlu1 %560  ;;  %v566_v25 = vpop.permute.xlu0 %565 }
 0x111   : > { %1282 = vmatmul.mubr.msk.f32.vlgmr.msra.gmra.mrb[0].mxu0 %vm244_vm1, %v1179_v20  ;;  %v615_v20 = vld [vmem:[%s1629_s3 + $0x18] sm:$0xff] }
 0x112   : > { %1284 = vmatprep.mubr.msk.f32.mxu0 %vm244_vm1, %v1180_v21  ;;  %1366 = vmatpush3.bf16.msk.msra.mxu0 %vm1363_vm9, %v1432_v61  ;;  %v1199_v21 = vld [vmem:[%s1629_s3 + $0x40] sm:$0xff] }
 0x113   : > { %v571_v24 = vpop.permute.xlu1 %570 }
 0x115   : > { %1285 = vmatmul.mubr.msk.f32.gmra.mrb[2].mxu0 %vm244_vm1, %v1181_v22  ;;  %v1200_v22 = vld [vmem:[%s1629_s3 + $0x48] sm:$0xff] }
 0x117   : > { %v576_v31 = vpop.permute.xlu1 %575 }
 0x1e4   : > { %v1283_v26 = vpop.f32.mrb[0].mxu0 }
 0x1e5   : > { %v579_v27 = vadd.f32 %v1283_v26, %v566_v25  ;;  %v531_v28 = vpop.f32.mrb[1].mxu0 }
 0x1e6   : > { %v578_v29 = vadd.f32 %v561_v23, %v531_v28  ;;  %v1201_v23 = vld [vmem:[%s1629_s3 + $0x50] sm:$0xff] }
 0x1e7   : > { %v583_v30 = vmax.f32 %v579_v27, 0.0 }
 0x1e8   : > { %v582_v32 = vmax.f32 %v578_v29, 0.0  ;;  %v1286_v33 = vpop.f32.mrb[2].mxu0 }
 0x1e9   : > { %v581_v34 = vadd.f32 %v1286_v33, %v576_v31  ;;  %v541_v35 = vpop.f32.mrb[3].mxu0  ;;  %597 = vrot.lane.b32.xlu1 %v583_v30, %s1428_s24 }
 0x1ea   : > { %v580_v36 = vadd.f32 %v571_v24, %v541_v35  ;;  %595 = vrot.lane.b32.xlu0 %v582_v32, %s1428_s24  ;;  %v1202_v24 = vld [vmem:[%s1629_s3 + $0x58] sm:$0xff] }
 0x1eb   : > { %v585_v37 = vmax.f32 %v581_v34, 0.0 }
 0x1ec   : > { %v584_v38 = vmax.f32 %v580_v36, 0.0 }
 0x1ed   : > { %601 = vrot.lane.b32.xlu1 %v585_v37, %s1428_s24 }
 0x1ee   : > { %599 = vrot.lane.b32.xlu0 %v584_v38, %s1428_s24 }
 0x25b   : > { %v598_v39 = vpop.permute.xlu1 %597 }
 0x25c   : > { %609 = vst.msk [vmem:[#allocation3 + $0x8] sm:$0xff] %vm607_vm5, %v598_v39  ;;  %v596_v40 = vpop.permute.xlu0 %595 }
 0x25d   : > { %608 = vst.msk [vmem:[#allocation3] sm:$0xff] %vm607_vm5, %v596_v40 }
 0x25f   : > { %v602_v41 = vpop.permute.xlu1 %601 }
 0x260   : > { %611 = vst.msk [vmem:[#allocation3 + $0x18] sm:$0xff] %vm607_vm5, %v602_v41  ;;  %v600_v42 = vpop.permute.xlu0 %599 }
 0x261   : > { %610 = vst.msk [vmem:[#allocation3 + $0x10] sm:$0xff] %vm607_vm5, %v600_v42 }
 0x263   : > { %v617_v43 = vld [vmem:[#allocation3 + $0x8] sm:$0xff] }
 0x264   : > { %v616_v44 = vld [vmem:[#allocation3] sm:$0xff] }
 0x265   : > { %v1399_v46 = vpack.i.bf16 %v617_v43, %v616_v44  ;;  %v1347_v47 = vpack.c.bf16 %v617_v43, %v616_v44 }
 0x267   : > { %1400 = vrot.lane.b32.xlu0 %v1399_v46, %s1430_s28  ;;  %v619_v48 = vld [vmem:[#allocation3 + $0x18] sm:$0xff] }
 0x268   : > { %v618_v49 = vld [vmem:[#allocation3 + $0x10] sm:$0xff] }
 0x269   : > { %v1404_v50 = vpack.i.bf16 %v619_v48, %v618_v49  ;;  %v1351_v51 = vpack.c.bf16 %v619_v48, %v618_v49 }
 0x26b   : > { %1410 = vrot.lane.b32.xlu0 %v1399_v46, %s1429_s27  ;;  %1405 = vrot.lane.b32.xlu1 %v1404_v50, %s1430_s28 }
 0x26f   : > { %960 = vperm.xlu0 %1398, %v954_v52   ;;  %1415 = vrot.lane.b32.xlu1 %v1404_v50, %s1429_s27 }
 0x273   : > { %970 = vperm.xlu0 %1398, %v956_v53   ;;  %965 = vperm.xlu1 %1397, %v955_v54  }
 0x277   : > { %975 = vperm.xlu1 %1397, %v957_v55  }
 0x2d9   : > { %v1401_v62 = vpop.permute.xlu0 %1400 }
 0x2da   : > { %v1403_v63 = vunpack.i.h.bf16 %v1401_v62  ;;  %v1402_v0 = vunpack.i.l.bf16 %v1401_v62 }
 0x2dc   : > { %v1339_v1 = vpack.c.bf16 %v1403_v63, %v1402_v0 }
 0x2dd   : > { %v1406_v2 = vpop.permute.xlu1 %1405  ;;  %v1411_v6 = vpop.permute.xlu0 %1410 }
 0x2de   : > { %v1408_v3 = vunpack.i.h.bf16 %v1406_v2  ;;  %v1407_v4 = vunpack.i.l.bf16 %v1406_v2  ;;  %1340 = vmatprep.subr.bf16.mxu1 %v1339_v1  ;;  %v1413_v9 = vunpack.i.h.bf16 %v1411_v6  ;;  %v1412_v10 = vunpack.i.l.bf16 %v1411_v6 }
 0x2df   : > { %1342 = vmatpush3.bf16.msra.mxu1 %v1339_v1 }
 0x2e0   : > { %v1343_v5 = vpack.c.bf16 %v1408_v3, %v1407_v4  ;;  %v1355_v14 = vpack.c.bf16 %v1413_v9, %v1412_v10 }
 0x2e1   : > { %v1416_v11 = vpop.permute.xlu1 %1415 }
 0x2e2   : > { %1344 = vmatprep.subr.bf16.mxu1 %v1343_v5  ;;  %v1418_v15 = vunpack.i.h.bf16 %v1416_v11  ;;  %v1417_v16 = vunpack.i.l.bf16 %v1416_v11 }
 0x2e3   : > { %1346 = vmatpush3.bf16.msra.mxu1 %v1343_v5 }
 0x2e4   : > { %1348 = vmatprep.subr.bf16.mxu1 %v1347_v47  ;;  %v1359_v19 = vpack.c.bf16 %v1418_v15, %v1417_v16 }
 0x2e6   : > { %1296 = vmatmul.mubr.msk.f32.vlgmr.msra.gmra.mrb[0].mxu1 %vm641_vm6, %v1188_v7 }
 0x2e7   : > { %1350 = vmatpush3.bf16.msra.mxu1 %v1347_v47  ;;  %1298 = vmatprep.mubr.msk.f32.mxu1 %vm641_vm6, %v1189_v8 }
 0x2e8   : > { %1352 = vmatprep.subr.bf16.mxu1 %v1351_v51 }
 0x2ea   : > { %1299 = vmatmul.mubr.msk.f32.gmra.mrb[2].mxu1 %vm641_vm6, %v1190_v12 }
 0x2eb   : > { %1354 = vmatpush3.bf16.msra.mxu1 %v1351_v51  ;;  %1309 = vmatprep.mubr.msk.f32.mxu1 %vm641_vm6, %v612_v13 }
 0x2ec   : > { %1356 = vmatprep.subr.bf16.mxu1 %v1355_v14 }
 0x2ee   : > { %1310 = vmatmul.mubr.msk.f32.vlgmr.msra.gmra.mrb[0].mxu1 %vm641_vm6, %v613_v17  ;;  %v961_v26 = vpop.permute.xlu0 %960 }
 0x2ef   : > { %1358 = vmatpush3.bf16.msra.mxu1 %v1355_v14  ;;  %1312 = vmatprep.mubr.msk.f32.mxu1 %vm641_vm6, %v614_v18 }
 0x2f0   : > { %1360 = vmatprep.subr.bf16.mxu1 %v1359_v19 }
 0x2f2   : > { %1313 = vmatmul.mubr.msk.f32.gmra.mrb[2].mxu1 %vm641_vm6, %v615_v20  ;;  %v966_v25 = vpop.permute.xlu1 %965  ;;  %v971_v34 = vpop.permute.xlu0 %970 }
 0x2f3   : > { %1362 = vmatpush3.bf16.msra.mxu1 %v1359_v19  ;;  %1323 = vmatprep.mubr.msk.f32.mxu1 %vm641_vm6, %v1199_v21 }
 0x2f6   : > { %1324 = vmatmul.mubr.msk.f32.vlgmr.msra.gmra.mrb[0].mxu1 %vm641_vm6, %v1200_v22  ;;  %v976_v31 = vpop.permute.xlu1 %975 }
 0x2f7   : > { %1326 = vmatprep.mubr.msk.f32.mxu1 %vm641_vm6, %v1201_v23 }
 0x2fa   : > { %1327 = vmatmul.mubr.msk.f32.gmra.mrb[2].mxu1 %vm641_vm6, %v1202_v24 }
 0x3c9   : > { %v1325_v27 = vpop.f32.mrb[0].mxu1 }
 0x3ca   : > { %v979_v28 = vadd.f32 %v1325_v27, %v966_v25  ;;  %v931_v29 = vpop.f32.mrb[1].mxu1 }
 0x3cb   : > { %v978_v30 = vadd.f32 %v961_v26, %v931_v29 }
 0x3cc   : > { %v983_v35 = vmax.f32 %v979_v28, 0.0 }
 0x3cd   : > { %v982_v32 = vmax.f32 %v978_v30, 0.0  ;;  %v1328_v33 = vpop.f32.mrb[2].mxu1 }
 0x3ce   : > { %v981_v36 = vadd.f32 %v1328_v33, %v976_v31  ;;  %v941_v37 = vpop.f32.mrb[3].mxu1 }
 0x3cf   : > { %v980_v38 = vadd.f32 %v971_v34, %v941_v37  ;;  %1333 = vmatprep.mubr.msk.f32.mxu0 %vm998_vm10, %v982_v32 }
 0x3d0   : > { %1334 = vmatmul.mubr.msk.f32.vlgmr.msra.gmra.mrb[4].mxu0 %vm998_vm10, %v983_v35  ;;  %v985_v40 = vmax.f32 %v981_v36, 0.0 }
 0x3d1   : > { %v984_v39 = vmax.f32 %v980_v38, 0.0 }
 0x3d3   : > { %1336 = vmatprep.mubr.msk.f32.mxu0 %vm998_vm10, %v984_v39 }
 0x3d4   : > { %1337 = vmatmul.mubr.msk.f32.gmra.mrb[6].mxu0 %vm998_vm10, %v985_v40 }
 0x4a3   : > { %v1335_v41 = vpop.f32.mrb[4].mxu0 }
 0x4a4   : > { %1098 = vst.msk [vmem:[%s221_s26 + $0x8] sm:$0xff] %vm1096_vm11, %v1335_v41  ;;  %v1077_v42 = vpop.f32.mrb[5].mxu0 }
 0x4a5   : > { %1097 = vst.msk [vmem:[%s221_s26] sm:$0xff] %vm1096_vm11, %v1077_v42 }
 0x4a7   : > { %v1338_v43 = vpop.f32.mrb[6].mxu0 }
 0x4a8   : > { %1100 = vst.msk [vmem:[%s221_s26 + $0x18] sm:$0xff] %vm1096_vm11, %v1338_v43  ;;  %v1087_v44 = vpop.f32.mrb[7].mxu0 }
 0x4a9   : > { %1099 = vst.msk [vmem:[%s221_s26 + $0x10] sm:$0xff] %vm1096_vm11, %v1087_v44 }
 0x4aa PF: > { %s15_s18 = sadd.s32 1, %s1425_s18  }
 0x4ab   : > { %p12_p4 = scmp.ge.s32.totalorder %s15_s18, 4  }
 0x4ad   :  { %14 = sbr.rel (!%p12_p4) target bundleno = 1 (0x1), region = 74 }

</bundles_post_ra>
